<compile_context>
chip_gen: v5e
topology: v5e:2x2
jax: 0.10.0
libtpu: 0.0.40
codegen_flags: <defaults>
</compile_context>

<pallas_src>
import functools

import jax
import jax.numpy as jnp
import numpy as np
from jax.experimental import pallas as pl
from jax.experimental.pallas import tpu as pltpu


# ----------------------------- Pallas kernels -------------------------------
def _fused_kernel_single_k(x_ref, w_ref, g_ref, bt_ref, o_ref, *, eps, slope):
    """One-shot: o = LeakyReLU(BN_batch(x @ w)) for one N tile (full K resident)."""
    y = jnp.dot(x_ref[...], w_ref[...], preferred_element_type=jnp.float32)
    mean = jnp.mean(y, axis=0, keepdims=True)
    var = jnp.mean((y - mean) ** 2, axis=0, keepdims=True)
    y = (y - mean) * jax.lax.rsqrt(var + eps)
    y = y * g_ref[...] + bt_ref[...]
    o_ref[...] = jnp.where(y > 0.0, y, slope * y)          # f32 epilogue (v5e-safe)


def _fused_kernel_k_split(x_ref, w_ref, g_ref, bt_ref, o_ref, *, eps, slope):
    """K-tiled: accumulate partial products into the resident f32 output block,
    apply BN (batch stats) + LeakyReLU at the last K step."""
    k = pl.program_id(1)
    part = jnp.dot(x_ref[...], w_ref[...], preferred_element_type=jnp.float32)

    @pl.when(k == 0)
    def _():
        o_ref[...] = part                                   # write, no zero-fill RMW

    @pl.when(k > 0)
    def _():
        o_ref[...] += part

    @pl.when(k == pl.num_programs(1) - 1)
    def _():
        y = o_ref[...]
        mean = jnp.mean(y, axis=0, keepdims=True)
        var = jnp.mean((y - mean) ** 2, axis=0, keepdims=True)
        y = (y - mean) * jax.lax.rsqrt(var + eps)
        y = y * g_ref[...] + bt_ref[...]
        o_ref[...] = jnp.where(y > 0.0, y, slope * y)       # f32 epilogue (v5e-safe)


# --------------------------- tiling / VMEM budget ----------------------------
def _vmem_budget_bytes():
    """Generation-aware VMEM budget (~3/4 of physical: 48 MiB v7x, 96 MiB v5e/v6e)."""
    try:
        cap = int(pltpu.get_tpu_info().vmem_capacity_bytes)
    except Exception:
        cap = 64 << 20                       # conservative (v7x-safe) fallback
    return max((cap * 3) // 4, 16 << 20)


def _footprint_bytes(M, tk, tn):
    # double-buffered bf16 inputs + f32 BN rows + f32 output block (x2 headroom)
    return 2 * (M * tk * 2 + tk * tn * 2 + 2 * tn * 4 + M * tn * 4)


def _choose_tiles(M, K, Np, budget):
    tn = Np if Np <= 128 else 128            # >=2 lane-dense N tiles when possible
    if _footprint_bytes(M, K, tn) + (1 << 20) <= budget:
        return tn, K                         # full K resident: no K pipeline at all
    for tk in (1024, 512, 256, 128):
        if K % tk == 0 and _footprint_bytes(M, tk, tn) + (1 << 20) <= budget:
            return tn, tk
    return tn, K                             # odd-K fallback: single full block


# ------------------------------- fused op -----------------------------------
def fused_linear_bn_leaky_packed(text, w_kn_bf16, gamma_row, beta_row, out_size,
                                 *, eps=1e-5, slope=0.2):
    """LeakyReLU(BatchNorm1d_train(text @ W)) with pre-packed weight/BN params.

    w_kn_bf16: (K, Np) bf16, already transposed and zero-padded to lane-dense Np.
    gamma_row/beta_row: (1, Np) f32 (gamma padded with 1, beta with 0).
    The Linear bias is intentionally omitted: it cancels under train-mode BN.
    M (batch) is never tiled/padded -- BN needs global batch statistics.
    """
    M, K = text.shape
    Kw, Np = w_kn_bf16.shape
    assert K == Kw and Np % 128 == 0

    budget = _vmem_budget_bytes()
    tn, tk = _choose_tiles(M, K, Np, budget)
    nn, nk = Np // tn, K // tk
    vmem_limit = int(min(max(2 * _footprint_bytes(M, tk, tn) + (2 << 20), 4 << 20),
                         budget))

    x_bf = text.astype(jnp.bfloat16)

    if nk == 1:
        kernel = functools.partial(_fused_kernel_single_k, eps=eps, slope=slope)
        grid = (nn,)
        in_specs = [
            pl.BlockSpec((M, K), lambda j: (0, 0)),          # activations (bf16)
            pl.BlockSpec((K, tn), lambda j: (0, j)),         # packed weights (bf16)
            pl.BlockSpec((1, tn), lambda j: (0, j)),         # BN gamma
            pl.BlockSpec((1, tn), lambda j: (0, j)),         # BN beta
        ]
        out_specs = pl.BlockSpec((M, tn), lambda j: (0, j))
        dims = ("parallel",)
    else:
        kernel = functools.partial(_fused_kernel_k_split, eps=eps, slope=slope)
        grid = (nn, nk)                                       # reduction axis last
        in_specs = [
            pl.BlockSpec((M, tk), lambda j, k: (0, k)),
            pl.BlockSpec((tk, tn), lambda j, k: (k, j)),
            pl.BlockSpec((1, tn), lambda j, k: (0, j)),
            pl.BlockSpec((1, tn), lambda j, k: (0, j)),
        ]
        out_specs = pl.BlockSpec((M, tn), lambda j, k: (0, j))
        dims = ("parallel", "arbitrary")

    out = pl.pallas_call(
        kernel,
        out_shape=jax.ShapeDtypeStruct((M, Np), jnp.float32),
        grid_spec=pltpu.PrefetchScalarGridSpec(
            num_scalar_prefetch=0,
            grid=grid,
            in_specs=in_specs,
            out_specs=out_specs,
        ),
        compiler_params=pltpu.CompilerParams(
            dimension_semantics=dims,
            vmem_limit_bytes=vmem_limit,
        ),
    )(x_bf, w_kn_bf16, gamma_row, beta_row)

    return out[:, :out_size] if Np != out_size else out


# ------------------------------ Embedding module ----------------------------
def init_embedding_params(key, in_size, out_size):
    """Raw PyTorch-layout parameters (Linear weight is (out, in))."""
    kw, kb, kg, kbt = jax.random.split(key, 4)
    return {
        "lin_w": jax.random.normal(kw, (out_size, in_size), jnp.float32) * 0.05,
        "lin_b": jax.random.normal(kb, (out_size,), jnp.float32) * 0.01,
        "bn_g": 1.0 + 0.1 * jax.random.normal(kg, (out_size,), jnp.float32),
        "bn_b": 0.1 * jax.random.normal(kbt, (out_size,), jnp.float32),
    }


def pack_embedding_params(params):
    """ONE-TIME weight preprocessing, hoisted out of the forward path:
    transpose to (K, N), zero-pad N to a lane-dense multiple of 128, cast to
    bf16, and prepare (1, Np) f32 BN rows. lin_b is dropped (cancels under
    train-mode BN). Padded weight columns are exactly 0, so padded outputs stay
    finite through BN/LeakyReLU and are sliced off after the kernel."""
    w = params["lin_w"]                                   # (out_size, in_size)
    out_size, _ = w.shape
    Np = max(128, ((out_size + 127) // 128) * 128)
    pad = Np - out_size
    w_kn = jnp.transpose(w)                               # (K, N)
    gamma, beta = params["bn_g"], params["bn_b"]
    if pad:
        w_kn = jnp.pad(w_kn, ((0, 0), (0, pad)))
        gamma = jnp.pad(gamma, (0, pad), constant_values=1.0)
        beta = jnp.pad(beta, (0, pad))
    return {
        "w_kn_bf16": w_kn.astype(jnp.bfloat16),
        "bn_g_row": gamma.reshape(1, Np).astype(jnp.float32),
        "bn_b_row": beta.reshape(1, Np).astype(jnp.float32),
    }


def embedding_forward(packed, out_size, x_nchw, text):
    """Pallas path. x_nchw: (B, C, 4, 4); text: (B, in_size) -> (B, C+out_size, 4, 4)."""
    embed = fused_linear_bn_leaky_packed(
        text, packed["w_kn_bf16"], packed["bn_g_row"], packed["bn_b_row"], out_size)
    B, E = embed.shape
    # embed.repeat(4,4,1,1).permute(2,3,0,1) == broadcast of (B, E) to (B, E, 4, 4).
    # TODO(synk): spatial tile + channel concat are pure layout ops; left to XLA
    # rather than forced through an extra Pallas call (it would be pure overhead).
    embed_resize = jnp.broadcast_to(embed[:, :, None, None], (B, E, 4, 4))
    return jnp.concatenate([x_nchw, embed_resize], axis=1)


def embedding_forward_ref(params, x_nchw, text):
    """Pure-JAX reference of the PyTorch module (train-mode BN, bias included),
    at the same bf16 matmul operand precision as the kernel."""
    y = jnp.dot(text.astype(jnp.bfloat16), params["lin_w"].T.astype(jnp.bfloat16),
                preferred_element_type=jnp.float32) + params["lin_b"][None, :]
    mean = jnp.mean(y, axis=0, keepdims=True)
    var = jnp.mean((y - mean) ** 2, axis=0, keepdims=True)
    y = (y - mean) * jax.lax.rsqrt(var + 1e-5)
    y = y * params["bn_g"][None, :] + params["bn_b"][None, :]
    y = jnp.where(y > 0.0, y, 0.2 * y)
    B, E = y.shape
    embed_resize = jnp.broadcast_to(y[:, :, None, None], (B, E, 4, 4))
    return jnp.concatenate([x_nchw, embed_resize], axis=1)
# TODO(synk): PyTorch BatchNorm1d in train mode also updates running_mean/var;
# those buffers are not tracked here (the forward output does not depend on them).


if __name__ == "__main__":
    # repeat(4,4,1,1) pins the spatial size to 4x4, so x is (B, C, 4, 4).
    # B=8 keeps matmul rows sublane-aligned; out_size=256 -> 2 parallel N tiles.
    B, C = 8, 4
    in_size, out_size = 128, 256

    key = jax.random.PRNGKey(0)
    kp, kx, kt = jax.random.split(key, 3)
    params = init_embedding_params(kp, in_size, out_size)
    packed = pack_embedding_params(params)                 # one-time, outside forward

    x = jax.random.normal(kx, (B, C, 4, 4), jnp.float32)   # NCHW like PyTorch
    text = jax.random.normal(kt, (B, in_size), jnp.float32)

    out = embedding_forward(packed, out_size, x, text)
    out = jax.block_until_ready(out)
    assert out.shape == (B, C + out_size, 4, 4), out.shape

    ref = jax.block_until_ready(embedding_forward_ref(params, x, text))
    np.testing.assert_allclose(np.asarray(out), np.asarray(ref),
                               rtol=2e-3, atol=2e-3)
    print("KERNEL_OK")
</pallas_src>

<mosaic_0001>
module attributes {stable_mosaic.version = 11 : i64} {
  func.func @_fused_kernel_single_k(%arg0: i32, %arg1: memref<8x128xbf16, #tpu.memory_space<vmem>>, %arg2: memref<128x128xbf16, #tpu.memory_space<vmem>>, %arg3: memref<1x128xf32, #tpu.memory_space<vmem>>, %arg4: memref<1x128xf32, #tpu.memory_space<vmem>>, %arg5: memref<8x128xf32, #tpu.memory_space<vmem>>) attributes {dimension_semantics = [#tpu.dimension_semantics<parallel>], iteration_bounds = array<i64: 2>, scalar_prefetch = 0 : i64, scratch_operands = 0 : i64, tpu.core_type = #tpu.core_type<tc>, window_params = [{pipeline_mode = #tpu.pipeline_mode<synchronous>, transform_indices = @transform_0, window_bounds = array<i64: 8, 128>}, {transform_indices = @transform_1, window_bounds = array<i64: 128, 128>}, {transform_indices = @transform_2, window_bounds = array<i64: 1, 128>}, {transform_indices = @transform_3, window_bounds = array<i64: 1, 128>}, {transform_indices = @transform_4, window_bounds = array<i64: 8, 128>}]} {
    %c0 = arith.constant 0 : index
    %c0_0 = arith.constant 0 : index
    %0 = vector.load %arg1[%c0, %c0_0] : memref<8x128xbf16, #tpu.memory_space<vmem>>, vector<8x128xbf16>
    %c0_1 = arith.constant 0 : index
    %c0_2 = arith.constant 0 : index
    %1 = vector.load %arg2[%c0_1, %c0_2] : memref<128x128xbf16, #tpu.memory_space<vmem>>, vector<128x128xbf16>
    %cst = arith.constant dense<0.000000e+00> : vector<8x128xf32>
    %2 = tpu.matmul %0, %1, %cst {dimension_numbers = #tpu.dot_dimension_numbers<[1], [0], [0], [1], [0, 0, 1, 1], [], []>} : vector<8x128xbf16>, vector<128x128xbf16>, vector<8x128xf32> -> vector<8x128xf32>
    %cst_3 = arith.constant dense<0.000000e+00> : vector<128xf32>
    %3 = vector.multi_reduction <add>, %2, %cst_3 [0] : vector<8x128xf32> to vector<128xf32>
    %4 = vector.shape_cast %3 : vector<128xf32> to vector<1x128xf32>
    %cst_4 = arith.constant 8.000000e+00 : f32
    %5 = vector.broadcast %cst_4 : f32 to vector<1x128xf32>
    %6 = arith.divf %4, %5 : vector<1x128xf32>
    %7 = vector.broadcast %6 : vector<1x128xf32> to vector<8x128xf32>
    %8 = arith.subf %2, %7 : vector<8x128xf32>
    %9 = arith.mulf %8, %8 : vector<8x128xf32>
    %cst_5 = arith.constant dense<0.000000e+00> : vector<128xf32>
    %10 = vector.multi_reduction <add>, %9, %cst_5 [0] : vector<8x128xf32> to vector<128xf32>
    %11 = vector.shape_cast %10 : vector<128xf32> to vector<1x128xf32>
    %cst_6 = arith.constant 8.000000e+00 : f32
    %12 = vector.broadcast %cst_6 : f32 to vector<1x128xf32>
    %13 = arith.divf %11, %12 : vector<1x128xf32>
    %14 = vector.broadcast %6 : vector<1x128xf32> to vector<8x128xf32>
    %15 = arith.subf %2, %14 : vector<8x128xf32>
    %cst_7 = arith.constant 9.99999974E-6 : f32
    %16 = vector.broadcast %cst_7 : f32 to vector<1x128xf32>
    %17 = arith.addf %13, %16 : vector<1x128xf32>
    %18 = math.rsqrt %17 : vector<1x128xf32>
    %19 = vector.broadcast %18 : vector<1x128xf32> to vector<8x128xf32>
    %20 = arith.mulf %15, %19 : vector<8x128xf32>
    %c0_8 = arith.constant 0 : index
    %c0_9 = arith.constant 0 : index
    %21 = vector.load %arg3[%c0_8, %c0_9] : memref<1x128xf32, #tpu.memory_space<vmem>>, vector<1x128xf32>
    %22 = vector.broadcast %21 : vector<1x128xf32> to vector<8x128xf32>
    %23 = arith.mulf %20, %22 : vector<8x128xf32>
    %c0_10 = arith.constant 0 : index
    %c0_11 = arith.constant 0 : index
    %24 = vector.load %arg4[%c0_10, %c0_11] : memref<1x128xf32, #tpu.memory_space<vmem>>, vector<1x128xf32>
    %25 = vector.broadcast %24 : vector<1x128xf32> to vector<8x128xf32>
    %26 = arith.addf %23, %25 : vector<8x128xf32>
    %cst_12 = arith.constant 0.000000e+00 : f32
    %27 = vector.broadcast %cst_12 : f32 to vector<8x128xf32>
    %28 = arith.cmpf ogt, %26, %27 : vector<8x128xf32>
    %cst_13 = arith.constant 2.000000e-01 : f32
    %29 = vector.broadcast %cst_13 : f32 to vector<8x128xf32>
    %30 = arith.mulf %29, %26 : vector<8x128xf32>
    %31 = arith.select %28, %26, %30 : vector<8x128xi1>, vector<8x128xf32>
    %c0_14 = arith.constant 0 : index
    %c0_15 = arith.constant 0 : index
    %32 = vector.load %arg5[%c0_14, %c0_15] : memref<8x128xf32, #tpu.memory_space<vmem>>, vector<8x128xf32>
    tpu.vector_store %arg5[%c0_14, %c0_15], %31 {strides = array<i32>} : memref<8x128xf32, #tpu.memory_space<vmem>>, vector<8x128xf32>,
    return
  }
  func.func @transform_0(%arg0: i32) -> (i32, i32) {
    %c0_i32 = arith.constant 0 : i32
    %c0_i32_0 = arith.constant 0 : i32
    %c0_i32_1 = arith.constant 0 : i32
    return %c0_i32, %c0_i32_0 : i32, i32
  }
  func.func @transform_1(%arg0: i32) -> (i32, i32) {
    %c0_i32 = arith.constant 0 : i32
    %c0_i32_0 = arith.constant 0 : i32
    return %c0_i32, %arg0 : i32, i32
  }
  func.func @transform_2(%arg0: i32) -> (i32, i32) {
    %c0_i32 = arith.constant 0 : i32
    %c0_i32_0 = arith.constant 0 : i32
    return %c0_i32, %arg0 : i32, i32
  }
  func.func @transform_3(%arg0: i32) -> (i32, i32) {
    %c0_i32 = arith.constant 0 : i32
    %c0_i32_0 = arith.constant 0 : i32
    return %c0_i32, %arg0 : i32, i32
  }
  func.func @transform_4(%arg0: i32) -> (i32, i32) {
    %c0_i32 = arith.constant 0 : i32
    %c0_i32_0 = arith.constant 0 : i32
    return %c0_i32, %arg0 : i32, i32
  }
}

</mosaic_0001>

<bundles_post_ra>
// kernel: tpu_custom_call.1
= control target key start
LH: loop header
LB: loop body
LE: loop exit
PB: predicated region body
PF: predicated region fallthrough
CT: control target
= control target key end

     0   :  { %9 = vsyncpa [#allocation3], 0  ;;  %s1034_s0 = inlined_call_operand.hbm [shape: bf16[8,128], index: 0, kind: input, shape index: {}]   ;;  %s1035_s1 = inlined_call_operand.hbm [shape: bf16[128,256], index: 1, kind: input, shape index: {}]   ;;  %s1036_s2 = inlined_call_operand.hbm [shape: f32[1,256], index: 2, kind: input, shape index: {}]   ;;  %s1037_s3 = inlined_call_operand.vmem [shape: f32[1,256], index: 3, kind: input, shape index: {}]   ;;  %s1038_s4 = inlined_call_operand.hbm [shape: f32[8,256], index: 4, kind: output, shape index: {}]  }
   0x1   :  { %10 = vsyncpa [#allocation6], 0 }
   0x2   :  { %12 = vsyncpa [#allocation6 + $0x1], 0 }
   0x3   :  { %13 = vsyncpa [#allocation4], 0 }
   0x4   :  { %15 = vsyncpa [#allocation4 + $0x1], 0  ;;  %s846_s15 = smov 0   ;;  %s848_s16 = smov 0  }
   0x5   :  { %s850_s17 = smov 0   ;;  %s852_s18 = smov 0  }
   0x6 LB: > { %s867_s19 = sadd.s32 1, %s814_s18   ;;  %s49_s20 = sadd.s32 1, %s810_s17  ;;  %s814_s18 = sphi %s852_s18, %s1051_s18   ;;  %s810_s17 = sphi %s850_s17, %s1050_s17   ;;  %s806_s16 = sphi %s848_s16, %s1049_s16   ;;  %s802_s15 = sphi %s846_s15, %s1048_s15  }
   0x7   : > { %s46_s21 = ssub.s32 %s814_s18, %s867_s19  ;;  %p56_p0 = scmp.ne.s32.totalorder %s810_s17, %s806_s16 }
   0x8   : > { %p47_p1 = scmp.eq.s32.totalorder %s46_s21, 0  ;;  %p57_p2 = scmp.eq.s32.totalorder %s814_s18, 0 }
   0x9   : > { %p608_p4 = scmp.lt.s32.totalorder %s814_s18, 2  ;;  %s176_s23 = sand.u32 1, %s814_s18  }
   0xa   : > { %s878_s22 = scalar_select %p47_p1, %s810_s17, %s49_s20  }
   0xb   : > { %p58_p5 = por %p57_p2, %p56_p0  ;;  %s178_s24 = sand.u32 1, %s810_s17  }
   0xc   : > { %s532_s25 = sshll.u32 %s178_s24, 6  ;;  %s533_s26 = sshll.u32 %s814_s18, 2 }
   0xd   : > { %s184_s29 = scalar_lea.hbm %s1035_s1, %s533_s26  ;;  %s180_s5 = scalar_lea.vmem [#allocation5], %s532_s25 }
   0xe   : > { %s185_s30 = sshll.u32 %s184_s29, 4  ;;  %s187_s6 = sshll.u32 %s180_s5, 4  ;;  %s186_s30 = int_to_ptr.hbm [resolvable:$true] %s185_s30  ;;  %s188_s6 = int_to_ptr.vmem [resolvable:$true] %s187_s6 }
   0xf   : > { %p893_p6 = pnand %p608_p4, %p58_p5  ;;  %s897_s8 = scalar_lea.sflag [#allocation6], %s176_s23 }
  0x10   : > { %s654_s9 = sshra.s32 %s186_s30, 4  ;;  %s661_s13 = scalar_lea.hbm %s1035_s1, 128  ;;  %s655_s9 = int_to_ptr.hbm [resolvable:$true] %s654_s9 }
  0x11   : > { %s656_s10 = scalar_lea.hbm %s655_s9, 64  ;;  %p658_p8 = pneg %p893_p6 }
  0x12   : > { %p657_p7 = scmp.ne.s32.totalorder %s655_s9, %s656_s10  ;;  %p662_p11 = scmp.lt.s32.totalorder %s655_s9, %s1035_s1 }
  0x13   : > { %p663_p12 = scmp.lt.s32.totalorder %s661_s13, %s656_s10 }
  0x14   : > { %p659_p9 = pnand %p658_p8, %p657_p7 }
  0x15   : > { %p664_p13 = por %p663_p12, %p662_p11 }
  0x16   : > { %p660_p10 = pneg %p659_p9 }
  0x18   : > { %p665_p1 = pnand %p664_p13, %p660_p10 }
  0x1a   : > { %668 = shalt.err (!%p665_p1)
}
  0x1b   : > { %s816_s21 = smov 128   ;;  %s817_s23 = smov 64  }
  0x1c   : > { %s818_s25 = smov 4   ;;  %s914_s26 = sadd.s32 4294967295, %s814_s18  }
  0x1d   : > { %599 = dma.hbm_to_vmem [thread:$0]  (!%p893_p6), %s186_s30, 1024, %s188_s6, %s897_s8, %s816_s21, %s817_s23, %s818_s25  }
  0x1e   : > { %s528_s27 = sadd.s32 4294967294, %s814_s18   ;;  %p62_p2 = scmp.ne.s32.totalorder %s806_s16, %s802_s15 }
  0x1f   : > { %p1039_p4 = scmp.eq.s32.totalorder %s914_s26, 0  ;;  %p138_p5 = scmp.eq.s32.totalorder %s914_s26, 1 }
  0x20   : > { %p144_p7 = scmp.eq.s32.totalorder %s528_s27, 1  ;;  %p529_p9 = scmp.ge.s32.totalorder %s814_s18, 1 }
  0x21   : > { %p924_p10 = por %p1039_p4, %p62_p2  ;;  %p931_p11 = por %p138_p5, %p56_p0 }
  0x22   : > { %p935_p12 = por %p144_p7, %p62_p2  ;;  %p151_p13 = scmp.lt.s32.totalorder %s814_s18, 3 }
  0x23   : > { %s163_s9 = sshll.u32 %s1034_s0, 4  ;;  %s819_s11 = smov [#allocation2]   ;;  %s164_s9 = int_to_ptr.hbm [resolvable:$true] %s163_s9 }
  0x24   : > { %p943_p1 = pnand %p529_p9, %p151_p13  ;;  %s165_s12 = sshll.u32 %s819_s11, 4  ;;  %s166_s12 = int_to_ptr.vmem [resolvable:$true] %s165_s12 }
  0x25   : > { %s203_s20 = scalar_lea.hbm %s1036_s2, %s814_s18  ;;  %s200_s23 = scalar_lea.vmem [#allocation7], %s178_s24 }
  0x26   : > { %p592_p0 = pneg %p943_p1  ;;  %s205_s21 = sshll.u32 %s203_s20, 4  ;;  %s206_s21 = int_to_ptr.hbm [resolvable:$true] %s205_s21 }
  0x27   : > { %s207_s25 = sshll.u32 %s200_s23, 4  ;;  %s714_s27 = sshra.s32 %s206_s21, 4  ;;  %s208_s25 = int_to_ptr.vmem [resolvable:$true] %s207_s25  ;;  %s715_s27 = int_to_ptr.hbm [resolvable:$true] %s714_s27 }
  0x28   : > { %p593_p2 = pnand %p592_p0, %p1039_p4  ;;  %s716_s5 = scalar_lea.hbm %s715_s27, 1 }
  0x29   : > { %p717_p5 = scmp.ne.s32.totalorder %s715_s27, %s716_s5  ;;  %s721_s13 = scalar_lea.hbm %s1036_s2, 2 }
  0x2a   : > { %595 = dma.hbm_to_vmem [thread:$0]  (!%p593_p2), %s164_s9, 64, %s166_s12, [#allocation3]  }
  0x2b   : > { %p719_p7 = pnand %p717_p5, %p658_p8  ;;  %p722_p13 = scmp.lt.s32.totalorder %s715_s27, %s1036_s2 }
  0x2c   : > { %p723_p0 = scmp.lt.s32.totalorder %s721_s13, %s716_s5 }
  0x2d   : > { %p720_p9 = pneg %p719_p7 }
  0x2e   : > { %p724_p3 = por %p723_p0, %p722_p13 }
  0x30   : > { %p725_p4 = pnand %p724_p3, %p720_p9 }
  0x32   : > { %728 = shalt.err (!%p725_p4)
}
  0x33   : > { %602 = dma.hbm_to_vmem [thread:$0]  (!%p893_p6), %s206_s21, 16, %s208_s25, %s897_s8  }
  0x34   : > { %222 = sbr.rel (%p943_p1) target bundleno = 284 (0x11c), region = 36  ;;  %p1045_p8 = scmp.eq.s32.totalorder (!%p943_p1), %s914_s26, 0 }
  0x39   : > { %789 = dma.done.wait (%p1045_p8), [#allocation3], 64   ;;  %p1046_p2 = pmov %p1045_p8 }
  0x3a   : > { %s229_s24 = sand.u32 1, %s914_s26   ;;  %s977_s9 = sand.u32 1, %s806_s16  }
  0x3b   : > { %791 = vsyncadd (%p1046_p2), [#allocation3], 4294967232  ;;  %s536_s12 = sshll.u32 %s977_s9, 6  ;;  %s230_s7 = scalar_lea.sflag [#allocation6], %s229_s24 }
  0x3c   : > { %s233_s23 = scalar_lea.vmem [#allocation5], %s536_s12 }
  0x3d   : > { %793 = dma.done.wait (%p924_p10), %s230_s7, 1040  }
  0x3e   : > { %795 = vsyncadd (%p924_p10), %s230_s7, 4294966256  ;;  %p275_p3 = scmp.lt.s32.totalorder %s914_s26, 1  ;;  %v581_v0 = vld [vmem:[%s233_s23 + $0x38] sm:$0xff]  ;;  %v580_v1 = vld [vmem:[%s233_s23 + $0x30] sm:$0xff]  ;;  %s242_s27 = scalar_lea.vmem [#allocation7], %s977_s9  ;;  %v820_v9 = vmov 8.0  }
  0x3f   : > { %343 = vmatpush.bf16.msra.mxu0 %v581_v0  ;;  %v579_v2 = vld [vmem:[%s233_s23 + $0x28] sm:$0xff]  ;;  %v578_v3 = vld [vmem:[%s233_s23 + $0x20] sm:$0xff]  ;;  %v577_v4 = vld [vmem:[%s233_s23 + $0x18] sm:$0xff]  ;;  %650 = vrcp.f32 %v820_v9  ;;  %s537_s28 = sshll.u32 %s977_s9, 3  ;;  %s571_s5 = sshll.u32 %s914_s26, 3 }
  0x40   : > { %s986_s8 = scalar_select %p275_p3, %s914_s26, 1  ;;  %v576_v5 = vld [vmem:[%s233_s23 + $0x10] sm:$0xff]  ;;  %v575_v6 = vld [vmem:[%s233_s23 + $0x8] sm:$0xff]  ;;  %v574_v7 = vld [vmem:[%s233_s23] sm:$0xff] }
  0x41   : > { %v278_v8 = vld [vmem:[#allocation2] sm:$0xf]  ;;  %s416_s20 = scalar_lea.hbm %s1038_s4, %s571_s5  ;;  %s274_s24 = scalar_lea.vmem [#allocation8], %s537_s28 }
  0x42   : > { %s277_s25 = scalar_lea.vmem %s1037_s3, %s986_s8  ;;  %v648_v41 = vld [vmem:[%s242_s27] ss:$0 sm:$0xff]  ;;  %s418_s12 = sshll.u32 %s274_s24, 4  ;;  %s419_s12 = int_to_ptr.vmem [resolvable:$true] %s418_s12 }
  0x43   : > { %344 = vmatpush.bf16.msra.mxu0 %v580_v1  ;;  %v649_v44 = vld [vmem:[%s277_s25] ss:$0 sm:$0xff]  ;;  %s420_s7 = sshll.u32 %s416_s20, 4  ;;  %s406_s26 = scalar_lea.sflag [#allocation4], %s977_s9  ;;  %s421_s7 = int_to_ptr.hbm [resolvable:$true] %s420_s7 }
  0x44   : > { %s758_s23 = sshra.s32 %s421_s7, 4  ;;  %s764_s25 = scalar_lea.hbm %s1038_s4, 16  ;;  %s759_s23 = int_to_ptr.hbm [resolvable:$true] %s758_s23 }
  0x45   : > { %v651_v10 = vpop.eup %650  ;;  %s760_s8 = scalar_lea.hbm %s759_s23, 8  ;;  %p765_p1 = scmp.lt.s32.totalorder %s759_s23, %s1038_s4 }
  0x46   : > { %v363_v11 = vmul.f32 8.0, %v651_v10  ;;  %vm367_vm0 = vweird.f32 %v651_v10  ;;  %p761_p6 = scmp.ne.s32.totalorder %s759_s23, %s760_s8  ;;  %p766_p5 = scmp.lt.s32.totalorder %s764_s25, %s760_s8 }
  0x47   : > { %345 = vmatpush.bf16.msra.mxu0 %v579_v2 }
  0x48   : > { %v364_v12 = vsub.f32 1.0, %v363_v11  ;;  %p762_p4 = pnand %p761_p6, %p931_p11  ;;  %p767_p7 = por %p766_p5, %p765_p1 }
  0x4a   : > { %v365_v15 = vmul.f32 %v651_v10, %v364_v12  ;;  %p763_p10 = pneg %p762_p4 }
  0x4b   : > { %346 = vmatpush.bf16.msra.mxu0 %v578_v3 }
  0x4c   : > { %v366_v18 = vadd.f32 %v651_v10, %v365_v15  ;;  %p768_p9 = pnand %p767_p7, %p763_p10 }
  0x4e   : > { %v368_v22 = vsel %vm367_vm0, %v651_v10, %v366_v18 }
  0x4f   : > { %347 = vmatpush.bf16.msra.mxu0 %v577_v4 }
  0x53   : > { %348 = vmatpush.bf16.msra.mxu0 %v576_v5 }
  0x57   : > { %349 = vmatpush.bf16.msra.mxu0 %v575_v6 }
  0x5b   : > { %350 = vmatpush.bf16.msra.mxu0 %v574_v7 }
  0x5e   : > { %351 = vmatmul.bf16.vlgmr.msra.gmra.mxu0 %v278_v8 }
  0xdb   : > { %v352_v13 = vpop.f32.mrf.mxu0 }
  0xdc   : > { %v356_v14 = vrot.slane %v352_v13, 4 }
  0xde   : > { %v357_v16 = vadd.f32 %v356_v14, %v352_v13 }
  0xe0   : > { %v358_v17 = vrot.slane %v357_v16, 2 }
  0xe2   : > { %v359_v19 = vadd.f32 %v358_v17, %v357_v16 }
  0xe3   : > { %v354_v20 = vpop.f32.mrf.mxu0 }
  0xe4   : > { %v360_v21 = vrot.slane %v359_v19, 1 }
  0xe6   : > { %v361_v23 = vadd.f32 %v360_v21, %v359_v19 }
  0xe8   : > { %v369_v24 = vmul.f32 %v368_v22, %v361_v23 }
  0xea   : > { %v370_v25 = vsub.f32 %v352_v13, %v369_v24 }
  0xec   : > { %v371_v26 = vmul.f32 %v370_v25, %v370_v25 }
  0xee   : > { %v372_v27 = vrot.slane %v371_v26, 4 }
  0xf0   : > { %v373_v28 = vadd.f32 %v372_v27, %v371_v26 }
  0xf2   : > { %v374_v29 = vrot.slane %v373_v28, 2 }
  0xf4   : > { %v375_v30 = vadd.f32 %v374_v29, %v373_v28 }
  0xf6   : > { %v376_v31 = vrot.slane %v375_v30, 1 }
  0xf8   : > { %v377_v32 = vadd.f32 %v376_v31, %v375_v30 }
  0xfa   : > { %v378_v33 = vmul.f32 %v377_v32, %v368_v22 }
  0xfc   : > { %v379_v34 = vadd.f32 1e-05, %v378_v33 }
  0xfe   : > { %652 = vrsqrt.f32 %v379_v34  ;;  %vm386_vm2 = vweird.f32 %v379_v34 }
 0x104   : > { %v653_v35 = vpop.eup %652 }
 0x105   : > { %v381_v36 = vmul.f32 %v653_v35, %v379_v34  ;;  %vm387_vm1 = vweird.f32 %v653_v35 }
 0x106   : > { %vm388_vm3 = vmor %vm386_vm2, %vm387_vm1 }
 0x107   : > { %v382_v37 = vmul.f32 %v653_v35, %v381_v36 }
 0x109   : > { %v383_v38 = vmul.f32 0.5, %v382_v37 }
 0x10b   : > { %v384_v39 = vsub.f32 1.5, %v383_v38 }
 0x10d   : > { %v385_v40 = vmul.f32 %v653_v35, %v384_v39 }
 0x10f   : > { %v389_v42 = vsel %vm388_vm3, %v653_v35, %v385_v40 }
 0x110   : > { %v390_v43 = vmul.f32 %v389_v42, %v370_v25 }
 0x112   : > { %v395_v45 = vmul.f32 %v648_v41, %v390_v43 }
 0x114   : > { %v400_v46 = vadd.f32 %v649_v44, %v395_v45 }
 0x116   : > { %vm401_vm4 = vcmp.gt.f32.partialorder %v400_v46, 0.0  ;;  %v402_v47 = vmul.f32 0.2, %v400_v46 }
 0x118   : > { %v403_v48 = vsel %vm401_vm4, %v400_v46, %v402_v47 }
 0x119   : > { %404 = vst [vmem:[%s274_s24] sm:$0xff] %v403_v48 }
 0x11a   : > { %771 = shalt.err (!%p768_p9)
}
 0x11b   : > { %590 = dma.vmem_to_hbm [thread:$0]  (%p931_p11), %s419_s12, 128, %s421_s7, %s406_s26  }
 0x11c PF: > { %s432_s9 = sand.u32 1, %s802_s15   ;;  %p1047_p13 = scmp.ge.s32.totalorder %s814_s18, 2 }
 0x11d   : > { %s433_s5 = scalar_lea.sflag [#allocation4], %s432_s9 }
 0x11e   : > { %p604_p0 = pnand %p1047_p13, %p935_p12 }
 0x120   : > { %p605_p8 = pneg %p604_p0 }
 0x122   : > { %797 = dma.done.wait (%p605_p8), %s433_s5, 128  }
 0x123   : > { %799 = vsyncadd (%p605_p8), %s433_s5, 4294967168  ;;  %p18_p2 = scmp.ge.s32.totalorder %s867_s19, 4   ;;  %s1048_s15 = smov %s806_s16 }
 0x124   : > { %s1049_s16 = smov %s810_s17  ;;  %s1050_s17 = smov %s878_s22 }
 0x125   : > { %s1051_s18 = smov %s867_s19  ;;  %20 = sbr.rel (!%p18_p2) target bundleno = 6 (0x6), region = 100 }
 0x12a   :  { %439 = vsyncpa [#allocation3], 1 }
 0x12b   :  { %441 = vsyncpa [#allocation3 + $0x1], 1 }
 0x12c   :  { %442 = vsyncpa [#allocation6], 1 }
 0x12d   :  { %444 = vsyncpa [#allocation6 + $0x1], 1 }
 0x12e   :  { %445 = vsyncpa [#allocation4], 1 }
 0x12f   :  { %447 = vsyncpa [#allocation4 + $0x1], 1 }

</bundles_post_ra>
